<compile_context>
chip_gen: v7x
topology: tpu7x:2x2x1
jax: 0.10.0
libtpu: 0.0.40
codegen_flags: <defaults>
</compile_context>

<pallas_src>
import functools

import jax
import jax.numpy as jnp
from jax.experimental import pallas as pl
from jax.experimental.pallas import tpu as pltpu


def _round_up(x, m):
    return ((x + m - 1) // m) * m


def _urt_value_kernel(x_ref, w_ref, b_ref, out_ref, *, n_extractors, n_head):
    """One grid step over a class tile.

    x_ref:   (block_c, E*F)  flattened prototypes (lane-dense when E*F % 128 == 0)
    w_ref:   (E*F, E*K)      block-diagonal folded weight (temperature included)
    b_ref:   (1, E*K)        folded bias, f32
    out_ref: (block_c, E*K)  softmax-over-extractors scores, flattened
    """
    bc = x_ref.shape[0]
    e, k = n_extractors, n_head

    # Single 2-D MXU matmul on the lane-dense block; accumulate in f32.
    s = jnp.dot(x_ref[...], w_ref[...], preferred_element_type=jnp.float32)
    s = s + b_ref[...].astype(jnp.float32)

    # Numerically stable softmax over the E extractor groups (K columns each).
    # The (bc, E*K) -> (bc, E, K) reshape only touches this tiny score slab
    # (E*K lanes per class), never the big streamed input block.
    s3 = s.reshape(bc, e, k)
    m = jnp.max(s3, axis=1, keepdims=True)
    p = jnp.exp(s3 - m)
    denom = jnp.sum(p, axis=1, keepdims=True)
    # Exact division: kernel is HBM-bound, so the approximate EUP reciprocal
    # saves nothing and costs ~1e-3 in the normalization.
    out = p / denom
    out_ref[...] = out.reshape(bc, e * k).astype(out_ref.dtype)


def multihead_urt_value(cat_proto, w1, b1, w2, b2, temp=1.0, block_c=None):
    """Pallas implementation of MultiHeadURT_value.forward.

    Args:
      cat_proto: (n_class, n_extractors, fea_dim)
      w1: (fea_dim, hid_dim), b1: (hid_dim,)   (PyTorch weights pre-transposed)
      w2: (hid_dim, n_head),  b2: (n_head,)
      temp: softmax temperature.
      block_c: optional tile size along n_class (auto-sized if None).
    Returns:
      score: (n_class, n_extractors, n_head) float32
    """
    n_class, n_extractors, fea_dim = cat_proto.shape
    n_head = w2.shape[1]
    E, F, K = n_extractors, fea_dim, n_head
    EF, EK = E * F, E * K

    f32 = jnp.float32
    hi = jax.lax.Precision.HIGHEST

    # Fold both linears + temperature into one affine map (no nonlinearity
    # between them):  temp*((x@w1 + b1)@w2 + b2) = x@(temp*(w1@w2)) + temp*(b1@w2+b2)
    w12 = jnp.dot(w1.astype(f32), w2.astype(f32), precision=hi)          # (F, K)
    w_c = (jnp.asarray(temp, f32) * w12).astype(cat_proto.dtype)         # (F, K)
    b_c = jnp.asarray(temp, f32) * (
        jnp.dot(b1.astype(f32), w2.astype(f32), precision=hi) + b2.astype(f32))  # (K,)

    # Fold the extractor axis into the minor dim (free, contiguous reshape):
    #   x_flat[c, e*F + f]        = cat_proto[c, e, f]
    #   w_bd[e*F + f, e'*K + k]   = (e == e') * w_c[f, k]   (block-diagonal)
    # so x_flat @ w_bd reproduces the per-extractor linear with a lane-dense
    # input block and no in-kernel relayout of the big operand.
    x_flat = cat_proto.reshape(n_class, EF)
    w_bd = jnp.kron(jnp.eye(E, dtype=w_c.dtype), w_c)                    # (E*F, E*K)
    b_bd = jnp.tile(b_c, E).reshape(1, EK).astype(f32)                   # (1, E*K)

    in_bytes = cat_proto.dtype.itemsize

    if block_c is None:
        # Explicit VMEM budget per class row:
        #   2x input block (lane-dense) + 2x output block (lane-padded to 128)
        #   + in-body f32 temporaries (score slab + (E, K<-128)-padded softmax temps).
        out_row = _round_up(EK, 128) * 4
        tmp_row = 4 * _round_up(EK, 128) * 4 + 3 * E * _round_up(K, 128) * 4
        per_row = 2 * EF * in_bytes + 2 * out_row + tmp_row
        budget = 40 * 1024 * 1024      # headroom under the 48 MiB limit (v7x-safe)
        block_c = max(8, budget // per_row)
        block_c = min(block_c, 1024)   # per-step overhead already amortized here
    # Keep >= 2 grid blocks when possible so the "parallel" class grid can be
    # split across v7x's two TensorCores.
    if n_class >= 16:
        block_c = min(block_c, _round_up(pl.cdiv(n_class, 2), 8))
    if block_c >= n_class:
        block_c = n_class                        # single full-extent block
    else:
        block_c = max(8, (block_c // 8) * 8)     # sublane-aligned class tile
    block_c = int(block_c)

    # Ragged tail block: no pad / slice HBM passes.  Overhang rows produce
    # garbage only in rows that are never written back (per-class softmax is
    # row-independent).
    grid_c = pl.cdiv(n_class, block_c)

    out = pl.pallas_call(
        functools.partial(_urt_value_kernel, n_extractors=E, n_head=K),
        out_shape=jax.ShapeDtypeStruct((n_class, EK), jnp.float32),
        grid=(grid_c,),
        in_specs=[
            pl.BlockSpec((block_c, EF), lambda i: (i, 0)),   # streamed classes
            pl.BlockSpec((EF, EK), lambda i: (0, 0)),        # resident weight
            pl.BlockSpec((1, EK), lambda i: (0, 0)),         # resident bias
        ],
        out_specs=pl.BlockSpec((block_c, EK), lambda i: (i, 0)),
        compiler_params=pltpu.CompilerParams(
            dimension_semantics=("parallel",),   # shard class grid across 2 TCs on v7x
            vmem_limit_bytes=48 * 1024 * 1024,
        ),
        cost_estimate=pl.CostEstimate(
            flops=2 * n_class * E * F * K,
            transcendentals=n_class * E * K,
            bytes_accessed=(n_class * EF * in_bytes
                            + EF * EK * w_bd.dtype.itemsize
                            + EK * 4
                            + n_class * EK * 4),
        ),
    )(x_flat, w_bd, b_bd)

    # Free (contiguous) reshape back to the module's output layout.
    return out.reshape(n_class, E, K)


def _reference(cat_proto, w1, b1, w2, b2, temp=1.0):
    hi = jax.lax.Precision.HIGHEST
    h = jnp.einsum("cef,fh->ceh", cat_proto, w1, precision=hi) + b1
    s = jnp.einsum("ceh,hk->cek", h, w2, precision=hi) + b2
    return jax.nn.softmax(temp * s, axis=1)


if __name__ == "__main__":
    # Small shapes consistent with the module's forward.  n_class chosen so the
    # class grid has multiple blocks and a ragged tail (50 = 3*16 + 2).
    n_class, n_extractors, fea_dim = 50, 8, 64
    hid_dim, n_head = 32, 2
    temp = 1.5

    key = jax.random.PRNGKey(0)
    k_x, k_w1, k_b1, k_w2, k_b2 = jax.random.split(key, 5)

    cat_proto = jax.random.normal(k_x, (n_class, n_extractors, fea_dim), jnp.float32)

    # Linear params: weight stored as (in, out), bias (out,) — equals PyTorch's
    # x @ W.T + b with W of shape (out, in).
    bound1 = 1.0 / float(jnp.sqrt(jnp.asarray(fea_dim, jnp.float32)))
    w1 = jax.random.uniform(k_w1, (fea_dim, hid_dim), jnp.float32, -bound1, bound1)
    b1 = jax.random.uniform(k_b1, (hid_dim,), jnp.float32, -bound1, bound1)
    bound2 = 1.0 / float(jnp.sqrt(jnp.asarray(hid_dim, jnp.float32)))
    w2 = jax.random.uniform(k_w2, (hid_dim, n_head), jnp.float32, -bound2, bound2)
    b2 = jax.random.uniform(k_b2, (n_head,), jnp.float32, -bound2, bound2)

    # block_c=16 -> grid of 4 blocks with a ragged tail; no wrapper pad/slice.
    score = multihead_urt_value(cat_proto, w1, b1, w2, b2, temp=temp, block_c=16)
    score = jax.block_until_ready(score)

    ref = _reference(cat_proto, w1, b1, w2, b2, temp=temp)
    assert score.shape == (n_class, n_extractors, n_head)
    # Tolerance covers the f32 w1@w2 folding (associativity) and MXU precision.
    assert jnp.allclose(score, ref, atol=2e-3, rtol=2e-3), "mismatch vs reference"
    # Exact division in the finalize -> softmax rows sum to 1 within f32 rounding.
    assert jnp.allclose(jnp.sum(score, axis=1), 1.0, atol=1e-4)

    print("KERNEL_OK")
</pallas_src>

<mosaic_0001>
module attributes {stable_mosaic.version = 11 : i64} {
  func.func @_urt_value_kernel(%arg0: i32, %arg1: memref<16x512xf32, #tpu.memory_space<vmem>>, %arg2: memref<512x16xf32, #tpu.memory_space<vmem>>, %arg3: memref<1x16xf32, #tpu.memory_space<vmem>>, %arg4: memref<16x16xf32, #tpu.memory_space<vmem>>) attributes {dimension_semantics = [#tpu.dimension_semantics<parallel>], iteration_bounds = array<i64: 4>, scalar_prefetch = 0 : i64, scratch_operands = 0 : i64, tpu.core_type = #tpu.core_type<tc>, window_params = [{transform_indices = @transform_0, window_bounds = array<i64: 16, 512>}, {pipeline_mode = #tpu.pipeline_mode<synchronous>, transform_indices = @transform_1, window_bounds = array<i64: 512, 16>}, {pipeline_mode = #tpu.pipeline_mode<synchronous>, transform_indices = @transform_2, window_bounds = array<i64: 1, 16>}, {transform_indices = @transform_3, window_bounds = array<i64: 16, 16>}]} {
    %c0 = arith.constant 0 : index
    %c0_0 = arith.constant 0 : index
    %0 = vector.load %arg1[%c0, %c0_0] : memref<16x512xf32, #tpu.memory_space<vmem>>, vector<16x512xf32>
    %c0_1 = arith.constant 0 : index
    %c0_2 = arith.constant 0 : index
    %1 = vector.load %arg2[%c0_1, %c0_2] : memref<512x16xf32, #tpu.memory_space<vmem>>, vector<512x16xf32>
    %cst = arith.constant dense<0.000000e+00> : vector<16x16xf32>
    %2 = tpu.matmul %0, %1, %cst {dimension_numbers = #tpu.dot_dimension_numbers<[1], [0], [0], [1], [0, 0, 1, 1], [], []>} : vector<16x512xf32>, vector<512x16xf32>, vector<16x16xf32> -> vector<16x16xf32>
    %c0_3 = arith.constant 0 : index
    %c0_4 = arith.constant 0 : index
    %3 = vector.load %arg3[%c0_3, %c0_4] : memref<1x16xf32, #tpu.memory_space<vmem>>, vector<1x16xf32>
    %4 = vector.broadcast %3 : vector<1x16xf32> to vector<16x16xf32>
    %5 = arith.addf %2, %4 : vector<16x16xf32>
    %6 = vector.shape_cast %5 : vector<16x16xf32> to vector<16x8x2xf32>
    %cst_5 = arith.constant dense<0xFF800000> : vector<16x2xf32>
    %7 = vector.multi_reduction <maximumf>, %6, %cst_5 [1] : vector<16x8x2xf32> to vector<16x2xf32>
    %8 = vector.shape_cast %7 : vector<16x2xf32> to vector<16x1x2xf32>
    %9 = vector.broadcast %8 : vector<16x1x2xf32> to vector<16x8x2xf32>
    %10 = arith.subf %6, %9 : vector<16x8x2xf32>
    %11 = math.exp %10 : vector<16x8x2xf32>
    %cst_6 = arith.constant dense<0.000000e+00> : vector<16x2xf32>
    %12 = vector.multi_reduction <add>, %11, %cst_6 [1] : vector<16x8x2xf32> to vector<16x2xf32>
    %13 = vector.shape_cast %12 : vector<16x2xf32> to vector<16x1x2xf32>
    %14 = vector.broadcast %13 : vector<16x1x2xf32> to vector<16x8x2xf32>
    %15 = arith.divf %11, %14 : vector<16x8x2xf32>
    %16 = vector.shape_cast %15 : vector<16x8x2xf32> to vector<16x16xf32>
    %c0_7 = arith.constant 0 : index
    %c0_8 = arith.constant 0 : index
    %17 = vector.load %arg4[%c0_7, %c0_8] : memref<16x16xf32, #tpu.memory_space<vmem>>, vector<16x16xf32>
    tpu.vector_store %arg4[%c0_7, %c0_8], %16 {strides = array<i32>} : memref<16x16xf32, #tpu.memory_space<vmem>>, vector<16x16xf32>,
    return
  }
  func.func @transform_0(%arg0: i32) -> (i32, i32) {
    %c0_i32 = arith.constant 0 : i32
    %c0_i32_0 = arith.constant 0 : i32
    return %arg0, %c0_i32 : i32, i32
  }
  func.func @transform_1(%arg0: i32) -> (i32, i32) {
    %c0_i32 = arith.constant 0 : i32
    %c0_i32_0 = arith.constant 0 : i32
    %c0_i32_1 = arith.constant 0 : i32
    return %c0_i32, %c0_i32_0 : i32, i32
  }
  func.func @transform_2(%arg0: i32) -> (i32, i32) {
    %c0_i32 = arith.constant 0 : i32
    %c0_i32_0 = arith.constant 0 : i32
    %c0_i32_1 = arith.constant 0 : i32
    return %c0_i32, %c0_i32_0 : i32, i32
  }
  func.func @transform_3(%arg0: i32) -> (i32, i32) {
    %c0_i32 = arith.constant 0 : i32
    %c0_i32_0 = arith.constant 0 : i32
    return %arg0, %c0_i32 : i32, i32
  }
}

</mosaic_0001>

<bundles_post_ra>
// kernel: tpu_custom_call.1
= control target key start
LH: loop header
LB: loop body
LE: loop exit
PB: predicated region body
PF: predicated region fallthrough
CT: control target
= control target key end

     0   :  { %s2082_s12 = smov 0   ;;  %s2084_s13 = smov 0   ;;  %s2708_s0 = inlined_call_operand.vmem [shape: f32[50,512], index: 0, kind: input, shape index: {}]   ;;  %s2709_s1 = inlined_call_operand.vmem [shape: f32[512,16], index: 1, kind: input, shape index: {}]   ;;  %s2710_s2 = inlined_call_operand.vmem [shape: f32[1,16], index: 2, kind: input, shape index: {}]   ;;  %s2711_s3 = inlined_call_operand.vmem [shape: f32[50,16], index: 3, kind: output, shape index: {}]  }
   0x1   :  { %s2086_s14 = smov 0  }
   0x2 LB: > { %s2095_s15 = sadd.s32 4294967295, %s2012_s14   ;;  %s2097_s16 = sadd.s32 1, %s2012_s14   ;;  %s2012_s14 = sphi %s2086_s14, %s2715_s14   ;;  %s2008_s13 = sphi %s2084_s13, %s2714_s13   ;;  %s2004_s12 = sphi %s2082_s12, %s2713_s12  }
   0x3   : > { %s85_s17 = ssub.s32 %s2012_s14, %s2097_s16  ;;  %s88_s18 = sadd.s32 1, %s2008_s13 }
   0x4   : > { %p86_p0 = scmp.eq.s32.totalorder %s85_s17, 0  ;;  %p98_p1 = scmp.ne.s32.totalorder %s2008_s13, %s2004_s12 }
   0x5   : > { %p99_p2 = scmp.eq.s32.totalorder %s2095_s15, 3  ;;  %p1623_p3 = scmp.ge.s32.totalorder %s2012_s14, 1 }
   0x6   : > { %s2105_s19 = scalar_select %p86_p0, %s2008_s13, %s88_s18  }
   0x7   : > { %p2107_p4 = por %p99_p2, %p98_p1  ;;  %p149_p5 = scmp.lt.s32.totalorder %s2012_s14, 5 }
   0x9   : > { %p150_p6 = pnand %p1623_p3, %p149_p5 }
   0xa   : > { %v224_v0 = vld [vmem:[%s2709_s1 + $0x80] sm:$0xff] (!%p150_p6)  ;;  %v225_v1 = vld [vmem:[%s2709_s1 + $0x88] sm:$0xff] (!%p150_p6)  ;;  %v226_v11 = vld [vmem:[%s2709_s1 + $0x90] sm:$0xff] (!%p150_p6)  ;;  %s2157_s30 = sshll.u32 (!%p150_p6), %s2095_s15, 1  ;;  %s2048_s11 = smov (!%p150_p6), 122   ;;  %vm745_vm0 = vcmask (!%p150_p6), 15360  }
   0xb   : > { %153 = sbr.rel (%p150_p6) target bundleno = 711 (0x2c7), region = 32  ;;  %v208_v2 = vld [vmem:[%s2709_s1] sm:$0xff] (!%p150_p6)  ;;  %v1726_v3 = vpack.c.bf16 (!%p150_p6), %v225_v1, %v224_v0  ;;  %v209_v4 = vld [vmem:[%s2709_s1 + $0x8] sm:$0xff] (!%p150_p6)  ;;  %v227_v13 = vld [vmem:[%s2709_s1 + $0x98] sm:$0xff] (!%p150_p6)  ;;  %p184_p7 = scmp.lt.s32.totalorder (!%p150_p6), %s2157_s30, 6  ;;  %vm1380_vm1 = vcmask (!%p150_p6), 31744  }
   0xc   : > { %v256_v5 = vld [vmem:[%s2709_s1 + $0x180] sm:$0xff] (!%p150_p6)  ;;  %v257_v6 = vld [vmem:[%s2709_s1 + $0x188] sm:$0xff] (!%p150_p6)  ;;  %v1728_v7 = vpack.c.bf16 (!%p150_p6), %v209_v4, %v208_v2  ;;  %v210_v14 = vld [vmem:[%s2709_s1 + $0x10] sm:$0xff] (!%p150_p6)  ;;  %v1730_v16 = vpack.c.bf16 (!%p150_p6), %v227_v13, %v226_v11  ;;  %s2049_s14 = smov (!%p150_p6), 120   ;;  %s2050_s17 = smov (!%p150_p6), 118   ;;  %vm1383_vm2 = vcmask (!%p150_p6), 48128  }
   0xd   : > { %v1758_v8 = vpack.c.bf16 (!%p150_p6), %v257_v6, %v256_v5  ;;  %v240_v9 = vld [vmem:[%s2709_s1 + $0x100] sm:$0xff] (!%p150_p6)  ;;  %v241_v10 = vld [vmem:[%s2709_s1 + $0x108] sm:$0xff] (!%p150_p6)  ;;  %1727 = vmatprep.subr.bf16.mxu0 (!%p150_p6), %v1726_v3  ;;  %v211_v15 = vld [vmem:[%s2709_s1 + $0x18] sm:$0xff] (!%p150_p6)  ;;  %s2051_s18 = smov (!%p150_p6), 116   ;;  %s2052_s21 = smov (!%p150_p6), 114   ;;  %vm1386_vm3 = vcmask (!%p150_p6), 64512  }
   0xe   : > { %v1760_v12 = vpack.c.bf16 (!%p150_p6), %v241_v10, %v240_v9  ;;  %1729 = vmatpush3.bf16.msra.mxu0 (!%p150_p6), %v1728_v7  ;;  %v1732_v17 = vpack.c.bf16 (!%p150_p6), %v211_v15, %v210_v14  ;;  %v258_v18 = vld [vmem:[%s2709_s1 + $0x190] sm:$0xff] (!%p150_p6)  ;;  %v259_v19 = vld [vmem:[%s2709_s1 + $0x198] sm:$0xff] (!%p150_p6)  ;;  %v228_v23 = vld [vmem:[%s2709_s1 + $0xa0] sm:$0xff] (!%p150_p6)  ;;  %s2055_s22 = smov (!%p150_p6), 2   ;;  %s2056_s23 = smov (!%p150_p6), 4   ;;  %vm1389_vm4 = vcmask (!%p150_p6), 80896  }
   0xf   : > { %1759 = vmatprep.subr.bf16.mxu1 (!%p150_p6), %v1758_v8  ;;  %v242_v20 = vld [vmem:[%s2709_s1 + $0x110] sm:$0xff] (!%p150_p6)  ;;  %v1762_v21 = vpack.c.bf16 (!%p150_p6), %v259_v19, %v258_v18  ;;  %v243_v22 = vld [vmem:[%s2709_s1 + $0x118] sm:$0xff] (!%p150_p6)  ;;  %v229_v24 = vld [vmem:[%s2709_s1 + $0xa8] sm:$0xff] (!%p150_p6)  ;;  %1731 = vmatprep.subr.bf16.mxu0 (!%p150_p6), %v1730_v16  ;;  %s2057_s25 = smov (!%p150_p6), 6   ;;  %s2058_s26 = smov (!%p150_p6), 8   ;;  %vm1392_vm5 = vcmask (!%p150_p6), 97280  }
  0x10   : > { %1761 = vmatpush3.bf16.msra.mxu1 (!%p150_p6), %v1760_v12  ;;  %v1764_v25 = vpack.c.bf16 (!%p150_p6), %v243_v22, %v242_v20  ;;  %v1734_v26 = vpack.c.bf16 (!%p150_p6), %v229_v24, %v228_v23  ;;  %v212_v27 = vld [vmem:[%s2709_s1 + $0x20] sm:$0xff] (!%p150_p6)  ;;  %v213_v28 = vld [vmem:[%s2709_s1 + $0x28] sm:$0xff] (!%p150_p6)  ;;  %v230_v35 = vld [vmem:[%s2709_s1 + $0xb0] sm:$0xff] (!%p150_p6)  ;;  %s2059_s27 = smov (!%p150_p6), 10   ;;  %s2060_s29 = smov (!%p150_p6), 12   ;;  %vm1395_vm6 = vcmask (!%p150_p6), 113664  }
  0x11   : > { %v260_v29 = vld [vmem:[%s2709_s1 + $0x1a0] sm:$0xff] (!%p150_p6)  ;;  %1763 = vmatprep.subr.bf16.mxu1 (!%p150_p6), %v1762_v21  ;;  %v261_v30 = vld [vmem:[%s2709_s1 + $0x1a8] sm:$0xff] (!%p150_p6)  ;;  %v1736_v33 = vpack.c.bf16 (!%p150_p6), %v213_v28, %v212_v27  ;;  %v231_v36 = vld [vmem:[%s2709_s1 + $0xb8] sm:$0xff] (!%p150_p6)  ;;  %s2061_s5 = smov (!%p150_p6), 14   ;;  %s175_s6 = sand.u32 (!%p150_p6), 1, %s2004_s12   ;;  %vm1398_vm7 = vcmask (!%p150_p6), 130048  }
  0x12   : > { %v244_v31 = vld [vmem:[%s2709_s1 + $0x120] sm:$0xff]  ;;  %v245_v32 = vld [vmem:[%s2709_s1 + $0x128] sm:$0xff]  ;;  %1733 = vmatpush3.bf16.msra.mxu0 %v1732_v17  ;;  %v1766_v34 = vpack.c.bf16 %v261_v30, %v260_v29  ;;  %v214_v37 = vld [vmem:[%s2709_s1 + $0x30] sm:$0xff]  ;;  %v1738_v39 = vpack.c.bf16 %v231_v36, %v230_v35  ;;  %s2220_s28 = scalar_select %p184_p7, %s2157_s30, 6 }
  0x13   : > { %1735 = vmatprep.subr.bf16.mxu0 %v1734_v26  ;;  %v1768_v38 = vpack.c.bf16 %v245_v32, %v244_v31  ;;  %v215_v40 = vld [vmem:[%s2709_s1 + $0x38] sm:$0xff]  ;;  %v262_v41 = vld [vmem:[%s2709_s1 + $0x1b0] sm:$0xff]  ;;  %v232_v46 = vld [vmem:[%s2709_s1 + $0xc0] sm:$0xff]  ;;  %s1624_s7 = sshll.u32 %s175_s6, 4  ;;  %s1409_s8 = ssub.s32 (%p2107_p4), 7, %s2157_s30 }
  0x14   : > { %1765 = vmatpush3.bf16.msra.mxu1 %v1764_v25  ;;  %v263_v42 = vld [vmem:[%s2709_s1 + $0x1b8] sm:$0xff]  ;;  %v246_v44 = vld [vmem:[%s2709_s1 + $0x130] sm:$0xff]  ;;  %v233_v47 = vld [vmem:[%s2709_s1 + $0xc8] sm:$0xff]  ;;  %v1740_v48 = vpack.c.bf16 %v215_v40, %v214_v37  ;;  %s1646_s4 = sshll.u32 %s2220_s28, 5  ;;  %s2047_s28 = smov 126  }
  0x15   : > { %1767 = vmatprep.subr.bf16.mxu1 %v1766_v34  ;;  %v1770_v43 = vpack.c.bf16 %v263_v42, %v262_v41  ;;  %v247_v45 = vld [vmem:[%s2709_s1 + $0x138] sm:$0xff]  ;;  %v264_v49 = vld [vmem:[%s2709_s1 + $0x1c0] sm:$0xff]  ;;  %v265_v50 = vld [vmem:[%s2709_s1 + $0x1c8] sm:$0xff]  ;;  %v1742_v52 = vpack.c.bf16 %v233_v47, %v232_v46  ;;  %s2274_s24 = scalar_lea.vmem %s2708_s0, %s1646_s4  ;;  %s2654_s12 = scalar_lea.vmem [#allocation2], %s1624_s7  }
  0x16   : > { %1737 = vmatpush3.bf16.msra.mxu0 %v1736_v33  ;;  %v1772_v51 = vpack.c.bf16 %v247_v45, %v246_v44  ;;  %v216_v53 = vld [vmem:[%s2709_s1 + $0x40] sm:$0xff]  ;;  %v217_v54 = vld [vmem:[%s2709_s1 + $0x48] sm:$0xff]  ;;  %v1774_v56 = vpack.c.bf16 %v265_v50, %v264_v49  ;;  %v234_v58 = vld [vmem:[%s2709_s1 + $0xd0] sm:$0xff]  ;;  %s1647_s4 = sshll.u32 (%p2107_p4), %s2095_s15, 4  ;;  %p1410_p8 = scmp.lt.s32.totalorder (%p2107_p4), %s1409_s8, 2 }
  0x17   : > { %1739 = vmatprep.subr.bf16.mxu0 %v1738_v39  ;;  %v248_v55 = vld [vmem:[%s2709_s1 + $0x140] sm:$0xff]  ;;  %v249_v57 = vld [vmem:[%s2709_s1 + $0x148] sm:$0xff]  ;;  %v235_v59 = vld [vmem:[%s2709_s1 + $0xd8] sm:$0xff]  ;;  %v1744_v62 = vpack.c.bf16 %v217_v54, %v216_v53 }
  0x18   : > { %1769 = vmatpush3.bf16.msra.mxu1 %v1768_v38  ;;  %v266_v60 = vld [vmem:[%s2709_s1 + $0x1d0] sm:$0xff]  ;;  %v267_v61 = vld [vmem:[%s2709_s1 + $0x1d8] sm:$0xff]  ;;  %v1776_v63 = vpack.c.bf16 %v249_v57, %v248_v55  ;;  %v1746_v0 = vpack.c.bf16 %v235_v59, %v234_v58  ;;  %v236_v6 = vld [vmem:[%s2709_s1 + $0xe0] sm:$0xff] }
  0x19   : > { %1771 = vmatprep.subr.bf16.mxu1 %v1770_v43  ;;  %v218_v1 = vld [vmem:[%s2709_s1 + $0x50] sm:$0xff]  ;;  %v219_v2 = vld [vmem:[%s2709_s1 + $0x58] sm:$0xff]  ;;  %v1778_v4 = vpack.c.bf16 %v267_v61, %v266_v60  ;;  %v237_v7 = vld [vmem:[%s2709_s1 + $0xe8] sm:$0xff]  ;;  %v2053_v61 = vmov 1983009808  }
  0x1a   : > { %1741 = vmatpush3.bf16.msra.mxu0 %v1740_v48  ;;  %v250_v3 = vld [vmem:[%s2709_s1 + $0x150] sm:$0xff]  ;;  %v251_v5 = vld [vmem:[%s2709_s1 + $0x158] sm:$0xff]  ;;  %v268_v8 = vld [vmem:[%s2709_s1 + $0x1e0] sm:$0xff]  ;;  %v1748_v10 = vpack.c.bf16 %v219_v2, %v218_v1  ;;  %v1750_v14 = vpack.c.bf16 %v237_v7, %v236_v6 }
  0x1b   : > { %1743 = vmatprep.subr.bf16.mxu0 %v1742_v52  ;;  %v269_v9 = vld [vmem:[%s2709_s1 + $0x1e8] sm:$0xff]  ;;  %v220_v11 = vld [vmem:[%s2709_s1 + $0x60] sm:$0xff]  ;;  %v1780_v13 = vpack.c.bf16 %v251_v5, %v250_v3  ;;  %v238_v19 = vld [vmem:[%s2709_s1 + $0xf0] sm:$0xff] }
  0x1c   : > { %1773 = vmatpush3.bf16.msra.mxu1 %v1772_v51  ;;  %v221_v12 = vld [vmem:[%s2709_s1 + $0x68] sm:$0xff]  ;;  %v252_v15 = vld [vmem:[%s2709_s1 + $0x160] sm:$0xff]  ;;  %v1782_v18 = vpack.c.bf16 %v269_v9, %v268_v8  ;;  %v239_v20 = vld [vmem:[%s2709_s1 + $0xf8] sm:$0xff] }
  0x1d   : > { %1775 = vmatprep.subr.bf16.mxu1 %v1774_v56  ;;  %v253_v16 = vld [vmem:[%s2709_s1 + $0x168] sm:$0xff]  ;;  %v203_v21 = vld [vmem:[%s2274_s24 + $0x18] sm:$0xff]  ;;  %v270_v22 = vld [vmem:[%s2709_s1 + $0x1f0] sm:$0xff]  ;;  %v1752_v24 = vpack.c.bf16 %v221_v12, %v220_v11  ;;  %v1754_v26 = vpack.c.bf16 %v239_v20, %v238_v19 }
  0x1e   : > { %1745 = vmatpush3.bf16.msra.mxu0 %v1744_v62  ;;  %v201_v17 = vld [vmem:[%s2274_s24 + $0x8] sm:$0xff]  ;;  %v271_v23 = vld [vmem:[%s2709_s1 + $0x1f8] sm:$0xff]  ;;  %418 = vmatprep.mubr.f32.mxu1 %v203_v21  ;;  %v1784_v25 = vpack.c.bf16 %v253_v16, %v252_v15  ;;  %v222_v27 = vld [vmem:[%s2709_s1 + $0x70] sm:$0xff]  ;;  %v476_v62 = vunpack.c.l.s4 %v2053_v61 }
  0x1f   : > { %1747 = vmatprep.subr.bf16.mxu0 %v1746_v0  ;;  %343 = vmatprep.mubr.f32.mxu0 %v201_v17  ;;  %v223_v28 = vld [vmem:[%s2709_s1 + $0x78] sm:$0xff]  ;;  %v1786_v29 = vpack.c.bf16 %v271_v23, %v270_v22  ;;  %v254_v30 = vld [vmem:[%s2709_s1 + $0x170] sm:$0xff]  ;;  %v200_v34 = vld [vmem:[%s2274_s24] sm:$0xff] }
  0x20   : > { %1777 = vmatpush3.bf16.msra.mxu1 %v1776_v63  ;;  %v255_v31 = vld [vmem:[%s2709_s1 + $0x178] sm:$0xff]  ;;  %v1756_v32 = vpack.c.bf16 %v223_v28, %v222_v27  ;;  %v202_v35 = vld [vmem:[%s2274_s24 + $0x10] sm:$0xff]  ;;  %v205_v36 = vld [vmem:[%s2274_s24 + $0x28] sm:$0xff]  ;;  %v478_v63 = vlaneseq  ;;  %v477_v2 = vunpack.c.0.s8 %v476_v62 }
  0x21   : > { %1779 = vmatprep.subr.bf16.mxu1 %v1778_v4  ;;  %v1788_v33 = vpack.c.bf16 %v255_v31, %v254_v30  ;;  %v207_v37 = vld [vmem:[%s2274_s24 + $0x38] sm:$0xff]  ;;  %v204_v38 = vld [vmem:[%s2274_s24 + $0x20] sm:$0xff]  ;;  %v206_v39 = vld [vmem:[%s2274_s24 + $0x30] sm:$0xff]  ;;  %s2046_s24 = smov 124   ;;  %v2054_v4 = vmov 1934713408  }
  0x22   : > { %1749 = vmatpush3.bf16.msra.mxu0 %v1748_v10  ;;  %v1628_v41 = vld [vmem:[%s2710_s2] ss:$0 sm:$0xff]  ;;  %v479_v3 = vshrl.u32 %v478_v63, 7  ;;  %v540_v5 = vunpack.c.l.s4 %v2054_v4 }
  0x23   : > { %1751 = vmatprep.subr.bf16.mxu0 %v1750_v14 }
  0x24   : > { %1781 = vmatpush3.bf16.msra.mxu1 %v1780_v13  ;;  %v2329_v10 = vsub.s32 %v477_v2, %v479_v3  ;;  %v541_v13 = vunpack.c.0.s8 %v540_v5 }
  0x25   : > { %1783 = vmatprep.subr.bf16.mxu1 %v1782_v18 }
  0x26   : > { %1753 = vmatpush3.bf16.msra.mxu0 %v1752_v24  ;;  %v2335_v22 = vsub.s32 %v541_v13, %v479_v3 }
  0x27   : > { %1755 = vmatprep.subr.bf16.mxu0 %v1754_v26 }
  0x28   : > { %1785 = vmatpush3.bf16.msra.mxu1 %v1784_v25 }
  0x29   : > { %1787 = vmatprep.subr.bf16.mxu1 %v1786_v29 }
  0x2a   : > { %1757 = vmatpush3.bf16.msra.mxu0 %v1756_v32 }
  0x2c   : > { %1789 = vmatpush3.bf16.msra.mxu1 %v1788_v33 }
  0x2d   : > { %344 = vmatmul.mubr.f32.vlgmr.msra.gmra.mrb[0].mxu0 %v200_v34 }
  0x2e   : > { %348 = vmatprep.mubr.f32.mxu0 %v205_v36 }
  0x2f   : > { %419 = vmatmul.mubr.f32.vlgmr.msra.gmra.mrb[0].mxu1 %v202_v35 }
  0x30   : > { %423 = vmatprep.mubr.f32.mxu1 %v207_v37 }
  0x31   : > { %349 = vmatmul.mubr.f32.gmra.mrb[2].mxu0 %v204_v38 }
  0x33   : > { %424 = vmatmul.mubr.f32.gmra.mrb[2].mxu1 %v206_v39 }
 0x100   : > { %v1682_v40 = vpop.f32.mrb[0].mxu0 }
 0x101   : > { %v1683_v42 = vpop.f32.mrb[1].mxu0 }
 0x102   : > { %v1720_v43 = vpop.f32.mrb[0].mxu1  ;;  %v1684_v44 = vadd.f32 %v1683_v42, %v1682_v40 }
 0x103   : > { %v1721_v45 = vpop.f32.mrb[1].mxu1 }
 0x104   : > { %v1722_v46 = vadd.f32 %v1721_v45, %v1720_v43  ;;  %v346_v47 = vadd.f32 %v1684_v44, %v1628_v41  ;;  %v1685_v48 = vpop.f32.mrb[2].mxu0 }
 0x105   : > { %v1686_v49 = vpop.f32.mrb[3].mxu0 }
 0x106   : > { %v1723_v50 = vpop.f32.mrb[2].mxu1  ;;  %v421_v51 = vadd.f32 %v1722_v46, %v346_v47  ;;  %v1687_v52 = vadd.f32 %v1686_v49, %v1685_v48 }
 0x107   : > { %v1724_v53 = vpop.f32.mrb[3].mxu1 }
 0x108   : > { %v1725_v54 = vadd.f32 %v1724_v53, %v1723_v50  ;;  %v351_v55 = vadd.f32 %v1687_v52, %v1628_v41  ;;  %437 = vrot.lane.b32.xlu1 %v421_v51, %s2046_s24  ;;  %431 = vrot.lane.b32.xlu0 %v421_v51, %s2047_s28 }
 0x10a   : > { %v426_v56 = vadd.f32 %v1725_v54, %v351_v55 }
 0x10c   : > { %439 = vrot.lane.b32.xlu1 %v426_v56, %s2046_s24  ;;  %443 = vrot.lane.b32.xlu0 %v421_v51, %s2048_s11  ;;  %s2674_s24 = scalar_lea.vmem (%p2107_p4), %s2711_s3, %s1647_s4  }
 0x110   : > { %445 = vrot.lane.b32.xlu1 %v426_v56, %s2048_s11  ;;  %449 = vrot.lane.b32.xlu0 %v421_v51, %s2049_s14 }
 0x114   : > { %451 = vrot.lane.b32.xlu1 %v426_v56, %s2049_s14  ;;  %455 = vrot.lane.b32.xlu0 %v421_v51, %s2050_s17 }
 0x118   : > { %457 = vrot.lane.b32.xlu1 %v426_v56, %s2050_s17  ;;  %461 = vrot.lane.b32.xlu0 %v421_v51, %s2051_s18 }
 0x11c   : > { %463 = vrot.lane.b32.xlu1 %v426_v56, %s2051_s18  ;;  %433 = vrot.lane.b32.xlu0 %v426_v56, %s2047_s28 }
 0x120   : > { %469 = vrot.lane.b32.xlu1 %v426_v56, %s2052_s21  ;;  %467 = vrot.lane.b32.xlu0 %v421_v51, %s2052_s21 }
 0x17a   : > { %v438_v57 = vpop.permute.xlu1 %437  ;;  %v432_v58 = vpop.permute.xlu0 %431 }
 0x17b   : > { %v473_v11 = vcombine.low %v421_v51, %v438_v57  ;;  %v474_v12 = vcombine.high %v421_v51, %v438_v57 }
 0x17d   : > { %v481_v18 = vrot.slane %v473_v11, %v2329_v10  ;;  %v488_v19 = vrot.slane %v474_v12, %v2329_v10 }
 0x17e   : > { %v440_v59 = vpop.permute.xlu1 %439  ;;  %v444_v60 = vpop.permute.xlu0 %443 }
 0x17f   : > { %v489_v6 = vcombine.low %v432_v58, %v444_v60  ;;  %v490_v7 = vcombine.high %v432_v58, %v444_v60  ;;  %v609_v20 = vcombine.low %v426_v56, %v440_v59  ;;  %v610_v21 = vcombine.high %v426_v56, %v440_v59 }
 0x181   : > { %v497_v14 = vrot.slane %v489_v6, %v2329_v10  ;;  %v504_v15 = vrot.slane %v490_v7, %v2329_v10  ;;  %v617_v31 = vrot.slane %v609_v20, %v2329_v10  ;;  %v624_v32 = vrot.slane %v610_v21, %v2329_v10 }
 0x182   : > { %v446_v0 = vpop.permute.xlu1 %445  ;;  %v450_v1 = vpop.permute.xlu0 %449 }
 0x183   : > { %v537_v23 = vcombine.low %v481_v18, %v497_v14  ;;  %v538_v24 = vcombine.high %v481_v18, %v497_v14  ;;  %v553_v25 = vcombine.low %v488_v19, %v504_v15  ;;  %v554_v26 = vcombine.high %v488_v19, %v504_v15 }
 0x185   : > { %v2342_v39 = vrot.slane %v537_v23, %v2335_v22  ;;  %v2345_v40 = vrot.slane %v538_v24, %v2335_v22  ;;  %v2348_v41 = vrot.slane %v553_v25, %v2335_v22  ;;  %v2351_v42 = vrot.slane %v554_v26, %v2335_v22 }
 0x186   : > { %v452_v8 = vpop.permute.xlu1 %451  ;;  %v456_v9 = vpop.permute.xlu0 %455 }
 0x18a   : > { %v458_v16 = vpop.permute.xlu1 %457  ;;  %v462_v17 = vpop.permute.xlu0 %461 }
 0x18b   : > { %v505_v33 = vcombine.low %v450_v1, %v462_v17  ;;  %v506_v34 = vcombine.high %v450_v1, %v462_v17 }
 0x18d   : > { %v513_v53 = vrot.slane %v505_v33, %v2329_v10  ;;  %v520_v54 = vrot.slane %v506_v34, %v2329_v10 }
 0x18e   : > { %v464_v27 = vpop.permute.xlu1 %463  ;;  %v434_v28 = vpop.permute.xlu0 %433 }
 0x18f   : > { %v625_v29 = vcombine.low %v434_v28, %v446_v0  ;;  %v626_v30 = vcombine.high %v434_v28, %v446_v0  ;;  %v641_v35 = vcombine.low %v452_v8, %v464_v27  ;;  %v642_v36 = vcombine.high %v452_v8, %v464_v27 }
 0x191   : > { %v633_v37 = vrot.slane %v625_v29, %v2329_v10  ;;  %v640_v38 = vrot.slane %v626_v30, %v2329_v10  ;;  %v649_v55 = vrot.slane %v641_v35, %v2329_v10  ;;  %v656_v56 = vrot.slane %v642_v36, %v2329_v10 }
 0x192   : > { %v470_v43 = vpop.permute.xlu1 %469  ;;  %v468_v44 = vpop.permute.xlu0 %467 }
 0x193   : > { %v673_v45 = vcombine.low %v617_v31, %v633_v37  ;;  %v674_v46 = vcombine.high %v617_v31, %v633_v37  ;;  %v689_v47 = vcombine.low %v624_v32, %v640_v38  ;;  %v690_v48 = vcombine.high %v624_v32, %v640_v38 }
 0x194   : > { %v657_v49 = vcombine.low %v458_v16, %v470_v43  ;;  %v658_v50 = vcombine.high %v458_v16, %v470_v43  ;;  %v521_v51 = vcombine.low %v456_v9, %v468_v44  ;;  %v522_v52 = vcombine.high %v456_v9, %v468_v44 }
 0x195   : > { %v681_v61 = vrot.slane %v673_v45, %v2335_v22  ;;  %v688_v62 = vrot.slane %v674_v46, %v2335_v22  ;;  %v697_v63 = vrot.slane %v689_v47, %v2335_v22  ;;  %v704_v0 = vrot.slane %v690_v48, %v2335_v22 }
 0x196   : > { %v665_v57 = vrot.slane %v657_v49, %v2329_v10  ;;  %v672_v58 = vrot.slane %v658_v50, %v2329_v10  ;;  %v529_v59 = vrot.slane %v521_v51, %v2329_v10  ;;  %v536_v60 = vrot.slane %v522_v52, %v2329_v10 }
 0x198   : > { %v705_v1 = vcombine.low %v649_v55, %v665_v57  ;;  %v706_v2 = vcombine.high %v649_v55, %v665_v57  ;;  %v721_v3 = vcombine.low %v656_v56, %v672_v58  ;;  %v722_v4 = vcombine.high %v656_v56, %v672_v58 }
 0x199   : > { %v569_v5 = vcombine.low %v513_v53, %v529_v59  ;;  %v570_v6 = vcombine.high %v513_v53, %v529_v59  ;;  %v585_v7 = vcombine.low %v520_v54, %v536_v60  ;;  %v586_v8 = vcombine.high %v520_v54, %v536_v60 }
 0x19a   : > { %v713_v9 = vrot.slane %v705_v1, %v2335_v22  ;;  %v720_v11 = vrot.slane %v706_v2, %v2335_v22  ;;  %v729_v12 = vrot.slane %v721_v3, %v2335_v22  ;;  %v736_v13 = vrot.slane %v722_v4, %v2335_v22 }
 0x19b   : > { %v2370_v14 = vrot.slane %v569_v5, %v2335_v22  ;;  %v2373_v15 = vrot.slane %v570_v6, %v2335_v22  ;;  %v2376_v16 = vrot.slane %v585_v7, %v2335_v22  ;;  %v2379_v17 = vrot.slane %v586_v8, %v2335_v22 }
 0x19c   : > { %v2381_v18 = vcombine.low %v681_v61, %v713_v9  ;;  %v2383_v19 = vcombine.high %v681_v61, %v713_v9  ;;  %v2385_v20 = vcombine.low %v688_v62, %v720_v11  ;;  %v2387_v21 = vcombine.high %v688_v62, %v720_v11 }
 0x19d   : > { %v2389_v23 = vcombine.low %v697_v63, %v729_v12  ;;  %v2391_v24 = vcombine.high %v697_v63, %v729_v12  ;;  %v2393_v25 = vcombine.low %v704_v0, %v736_v13  ;;  %v2395_v26 = vcombine.high %v704_v0, %v736_v13 }
 0x19e   : > { %v802_v27 = vsel %vm745_vm0, %v2381_v18, -inf  ;;  %v809_v28 = vsel %vm745_vm0, %v2383_v19, -inf  ;;  %v816_v29 = vsel %vm745_vm0, %v2385_v20, -inf  ;;  %v823_v30 = vsel %vm745_vm0, %v2387_v21, -inf }
 0x19f   : > { %v803_v31 = vrot.slane %v802_v27, 4  ;;  %v810_v32 = vrot.slane %v809_v28, 4  ;;  %v817_v33 = vrot.slane %v816_v29, 4  ;;  %v824_v34 = vrot.slane %v823_v30, 4 }
 0x1a0   : > { %v830_v35 = vsel %vm745_vm0, %v2389_v23, -inf  ;;  %v837_v36 = vsel %vm745_vm0, %v2391_v24, -inf  ;;  %v844_v37 = vsel %vm745_vm0, %v2393_v25, -inf  ;;  %v851_v38 = vsel %vm745_vm0, %v2395_v26, -inf }
 0x1a1   : > { %v804_v43 = vmax.f32 %v802_v27, %v803_v31  ;;  %v811_v44 = vmax.f32 %v809_v28, %v810_v32  ;;  %v818_v45 = vmax.f32 %v816_v29, %v817_v33  ;;  %v825_v46 = vmax.f32 %v823_v30, %v824_v34 }
 0x1a2   : > { %v831_v47 = vrot.slane %v830_v35, 4  ;;  %v838_v48 = vrot.slane %v837_v36, 4  ;;  %v845_v49 = vrot.slane %v844_v37, 4  ;;  %v852_v50 = vrot.slane %v851_v38, 4 }
 0x1a3   : > { %v805_v51 = vrot.slane %v804_v43, 2  ;;  %v812_v52 = vrot.slane %v811_v44, 2  ;;  %v819_v53 = vrot.slane %v818_v45, 2  ;;  %v826_v54 = vrot.slane %v825_v46, 2 }
 0x1a4   : > { %v832_v55 = vmax.f32 %v830_v35, %v831_v47  ;;  %v839_v56 = vmax.f32 %v837_v36, %v838_v48  ;;  %v846_v57 = vmax.f32 %v844_v37, %v845_v49  ;;  %v853_v58 = vmax.f32 %v851_v38, %v852_v50 }
 0x1a5   : > { %v806_v59 = vmax.f32 %v804_v43, %v805_v51  ;;  %v813_v60 = vmax.f32 %v811_v44, %v812_v52  ;;  %v820_v61 = vmax.f32 %v818_v45, %v819_v53  ;;  %v827_v62 = vmax.f32 %v825_v46, %v826_v54 }
 0x1a6   : > { %v833_v63 = vrot.slane %v832_v55, 2  ;;  %v840_v0 = vrot.slane %v839_v56, 2  ;;  %v847_v1 = vrot.slane %v846_v57, 2  ;;  %v854_v2 = vrot.slane %v853_v58, 2 }
 0x1a7   : > { %v807_v3 = vrot.slane %v806_v59, 1  ;;  %v814_v4 = vrot.slane %v813_v60, 1  ;;  %v821_v5 = vrot.slane %v820_v61, 1  ;;  %v828_v6 = vrot.slane %v827_v62, 1 }
 0x1a8   : > { %v834_v7 = vmax.f32 %v832_v55, %v833_v63  ;;  %v841_v8 = vmax.f32 %v839_v56, %v840_v0  ;;  %v848_v9 = vmax.f32 %v846_v57, %v847_v1  ;;  %v855_v11 = vmax.f32 %v853_v58, %v854_v2 }
 0x1a9   : > { %v808_v12 = vmax.f32 %v806_v59, %v807_v3  ;;  %v815_v13 = vmax.f32 %v813_v60, %v814_v4  ;;  %v822_v27 = vmax.f32 %v820_v61, %v821_v5  ;;  %v829_v28 = vmax.f32 %v827_v62, %v828_v6 }
 0x1aa   : > { %v835_v29 = vrot.slane %v834_v7, 1  ;;  %v842_v30 = vrot.slane %v841_v8, 1  ;;  %v849_v31 = vrot.slane %v848_v9, 1  ;;  %v856_v32 = vrot.slane %v855_v11, 1 }
 0x1ab   : > { %v866_v33 = vsub.f32 %v2381_v18, %v808_v12  ;;  %v867_v34 = vsub.f32 %v2383_v19, %v815_v13  ;;  %v868_v35 = vsub.f32 %v2385_v20, %v822_v27  ;;  %v869_v36 = vsub.f32 %v2387_v21, %v829_v28 }
 0x1ac   : > { %v836_v37 = vmax.f32 %v834_v7, %v835_v29  ;;  %v843_v38 = vmax.f32 %v841_v8, %v842_v30  ;;  %v850_v43 = vmax.f32 %v848_v9, %v849_v31  ;;  %v857_v44 = vmax.f32 %v855_v11, %v856_v32 }
 0x1ad   : > { %v890_v45 = vmul.f32 1.442695, %v866_v33  ;;  %v892_v46 = vmul.f32 1.442695, %v867_v34  ;;  %v894_v47 = vmul.f32 1.442695, %v868_v35  ;;  %v2419_v48 = vcombine.low %v2342_v39, %v2370_v14 }
 0x1ae   : > { %v870_v49 = vsub.f32 %v2389_v23, %v836_v37  ;;  %v871_v18 = vsub.f32 %v2391_v24, %v843_v38  ;;  %v872_v19 = vsub.f32 %v2393_v25, %v850_v43  ;;  %v873_v20 = vsub.f32 %v2395_v26, %v857_v44 }
 0x1af   : > { %1894 = vpow2.f32 %v890_v45  ;;  %v896_v21 = vmul.f32 1.442695, %v869_v36  ;;  %v2427_v50 = vcombine.high %v2342_v39, %v2370_v14  ;;  %v2431_v51 = vcombine.low %v2345_v40, %v2373_v15 }
 0x1b0   : > { %1896 = vpow2.f32 %v892_v46  ;;  %v898_v52 = vmul.f32 1.442695, %v870_v49  ;;  %v900_v53 = vmul.f32 1.442695, %v871_v18  ;;  %v902_v23 = vmul.f32 1.442695, %v872_v19 }
 0x1b1   : > { %1898 = vpow2.f32 %v894_v47  ;;  %v904_v24 = vmul.f32 1.442695, %v873_v20  ;;  %v2435_v25 = vcombine.high %v2345_v40, %v2373_v15  ;;  %v2439_v26 = vcombine.low %v2348_v41, %v2376_v16 }
 0x1b2   : > { %1900 = vpow2.f32 %v896_v21  ;;  %v2443_v39 = vcombine.high %v2348_v41, %v2376_v16  ;;  %v2447_v14 = vcombine.low %v2351_v42, %v2379_v17  ;;  %v2451_v54 = vcombine.high %v2351_v42, %v2379_v17 }
 0x1b3   : > { %1902 = vpow2.f32 %v898_v52  ;;  %v746_v40 = vsel %vm745_vm0, %v2419_v48, -inf  ;;  %v753_v15 = vsel %vm745_vm0, %v2427_v50, -inf  ;;  %v760_v55 = vsel %vm745_vm0, %v2431_v51, -inf }
 0x1b4   : > { %1904 = vpow2.f32 %v900_v53  ;;  %v747_v41 = vrot.slane %v746_v40, 4  ;;  %v754_v16 = vrot.slane %v753_v15, 4  ;;  %v761_v56 = vrot.slane %v760_v55, 4 }
 0x1b5   : > { %1906 = vpow2.f32 %v902_v23  ;;  %v767_v57 = vsel %vm745_vm0, %v2435_v25, -inf  ;;  %v774_v42 = vsel %vm745_vm0, %v2439_v26, -inf  ;;  %v781_v17 = vsel %vm745_vm0, %v2443_v39, -inf }
 0x1b6   : > { %1908 = vpow2.f32 %v904_v24  ;;  %v748_v58 = vmax.f32 %v746_v40, %v747_v41  ;;  %v755_v59 = vmax.f32 %v753_v15, %v754_v16  ;;  %v762_v60 = vmax.f32 %v760_v55, %v761_v56 }
 0x1b7   : > { %v768_v61 = vrot.slane %v767_v57, 4  ;;  %v775_v62 = vrot.slane %v774_v42, 4  ;;  %v782_v63 = vrot.slane %v781_v17, 4  ;;  %v2467_v0 = vsel %vm745_vm0, %v2447_v14, -inf }
 0x1b8   : > { %v749_v1 = vrot.slane %v748_v58, 2  ;;  %v756_v2 = vrot.slane %v755_v59, 2  ;;  %v763_v3 = vrot.slane %v762_v60, 2  ;;  %v789_v8 = vrot.slane %v2467_v0, 4 }
 0x1b9   : > { %v2469_v4 = vpop.eup %1894  ;;  %v769_v5 = vmax.f32 %v767_v57, %v768_v61  ;;  %v776_v6 = vmax.f32 %v774_v42, %v775_v62  ;;  %v2471_v7 = vmax.f32 %v781_v17, %v782_v63  ;;  %v795_v32 = vsel %vm745_vm0, %v2451_v54, -inf }
 0x1ba   : > { %v2474_v9 = vpop.eup %1896  ;;  %v962_v11 = vsel %vm745_vm0, %v2469_v4, 0.0  ;;  %v750_v12 = vmax.f32 %v748_v58, %v749_v1  ;;  %v757_v13 = vmax.f32 %v755_v59, %v756_v2  ;;  %v764_v27 = vmax.f32 %v762_v60, %v763_v3 }
 0x1bb   : > { %v2478_v28 = vpop.eup %1898  ;;  %v963_v29 = vrot.slane %v962_v11, 4  ;;  %v969_v30 = vsel %vm745_vm0, %v2474_v9, 0.0  ;;  %v770_v31 = vrot.slane %v769_v5, 2  ;;  %v777_v37 = vrot.slane %v776_v6, 2 }
 0x1bc   : > { %v2484_v33 = vpop.eup %1900  ;;  %v970_v34 = vrot.slane %v969_v30, 4  ;;  %v976_v35 = vsel %vm745_vm0, %v2478_v28, 0.0  ;;  %v751_v36 = vrot.slane %v750_v12, 1  ;;  %v758_v46 = vrot.slane %v757_v13, 1 }
 0x1bd   : > { %v2488_v38 = vpop.eup %1902  ;;  %v964_v43 = vadd.f32 %v963_v29, %v962_v11  ;;  %v977_v44 = vrot.slane %v976_v35, 4  ;;  %v983_v45 = vsel %vm745_vm0, %v2484_v33, 0.0  ;;  %v765_v20 = vrot.slane %v764_v27, 1 }
 0x1be   : > { %v2492_v47 = vpop.eup %1904  ;;  %v971_v49 = vadd.f32 %v970_v34, %v969_v30  ;;  %v984_v18 = vrot.slane %v983_v45, 4  ;;  %v990_v19 = vsel %vm745_vm0, %v2488_v38, 0.0  ;;  %v752_v17 = vmax.f32 %v750_v12, %v751_v36 }
 0x1bf   : > { %v2496_v21 = vpop.eup %1906  ;;  %v965_v52 = vrot.slane %v964_v43, 2  ;;  %v978_v53 = vadd.f32 %v977_v44, %v976_v35  ;;  %v991_v23 = vrot.slane %v990_v19, 4  ;;  %v997_v24 = vsel %vm745_vm0, %v2492_v47, 0.0 }
 0x1c0   : > { %v2500_v40 = vpop.eup %1908  ;;  %v972_v15 = vrot.slane %v971_v49, 2  ;;  %v985_v55 = vadd.f32 %v984_v18, %v983_v45  ;;  %v998_v41 = vrot.slane %v997_v24, 4  ;;  %v1004_v16 = vsel %vm745_vm0, %v2496_v21, 0.0 }
 0x1c1   : > { %v979_v56 = vrot.slane %v978_v53, 2  ;;  %v992_v57 = vadd.f32 %v991_v23, %v990_v19  ;;  %v1005_v42 = vrot.slane %v1004_v16, 4  ;;  %v966_v58 = vadd.f32 %v965_v52, %v964_v43 }
 0x1c2   : > { %v986_v59 = vrot.slane %v985_v55, 2  ;;  %v999_v60 = vadd.f32 %v998_v41, %v997_v24  ;;  %v1011_v61 = vsel %vm745_vm0, %v2500_v40, 0.0  ;;  %v973_v62 = vadd.f32 %v972_v15, %v971_v49 }
 0x1c3   : > { %v993_v63 = vrot.slane %v992_v57, 2  ;;  %v1006_v1 = vadd.f32 %v1005_v42, %v1004_v16  ;;  %v1012_v2 = vrot.slane %v1011_v61, 4  ;;  %v2506_v3 = vadd.f32 %v979_v56, %v978_v53 }
 0x1c4   : > { %v2508_v11 = vadd.f32 %v986_v59, %v985_v55  ;;  %v1000_v29 = vrot.slane %v999_v60, 2  ;;  %v759_v30 = vmax.f32 %v757_v13, %v758_v46  ;;  %v766_v44 = vmax.f32 %v764_v27, %v765_v20 }
 0x1c5   : > { %v1007_v34 = vrot.slane %v1006_v1, 2  ;;  %v1013_v35 = vadd.f32 %v1012_v2, %v1011_v61  ;;  %v771_v12 = vmax.f32 %v769_v5, %v770_v31  ;;  %v994_v36 = vadd.f32 %v993_v63, %v992_v57 }
 0x1c6   : > { %v778_v43 = vmax.f32 %v776_v6, %v777_v37  ;;  %v784_v45 = vrot.slane %v2471_v7, 2  ;;  %v790_v18 = vmax.f32 %v2467_v0, %v789_v8  ;;  %v1001_v49 = vadd.f32 %v1000_v29, %v999_v60 }
 0x1c7   : > { %v2512_v19 = vadd.f32 %v1007_v34, %v1006_v1  ;;  %v772_v52 = vrot.slane %v771_v12, 1  ;;  %v796_v53 = vrot.slane %v795_v32, 4  ;;  %v858_v13 = vsub.f32 %v2419_v48, %v752_v17 }
 0x1c8   : > { %v779_v23 = vrot.slane %v778_v43, 1  ;;  %v785_v24 = vmax.f32 %v2471_v7, %v784_v45  ;;  %v791_v15 = vrot.slane %v790_v18, 2  ;;  %v1014_v46 = vrot.slane %v1013_v35, 2 }
 0x1c9   : > { %v773_v27 = vmax.f32 %v771_v12, %v772_v52  ;;  %v797_v5 = vmax.f32 %v795_v32, %v796_v53  ;;  %v859_v6 = vsub.f32 %v2427_v50, %v759_v30  ;;  %v860_v0 = vsub.f32 %v2431_v51, %v766_v44 }
 0x1ca   : > { %v780_v31 = vmax.f32 %v778_v43, %v779_v23  ;;  %v786_v37 = vrot.slane %v785_v24, 1  ;;  %v792_v20 = vmax.f32 %v790_v18, %v791_v15  ;;  %v874_v41 = vmul.f32 1.442695, %v858_v13 }
 0x1cb   : > { %v798_v8 = vrot.slane %v797_v5, 2  ;;  %v861_v55 = vsub.f32 %v2435_v25, %v773_v27  ;;  %v876_v16 = vmul.f32 1.442695, %v859_v6  ;;  %v878_v48 = vmul.f32 1.442695, %v860_v0 }
 0x1cc   : > { %v787_v56 = vmax.f32 %v785_v24, %v786_v37  ;;  %v793_v7 = vrot.slane %v792_v20, 1  ;;  %v862_v57 = vsub.f32 %v2439_v26, %v780_v31  ;;  %1910 = vpow2.f32 %v874_v41 }
 0x1cd   : > { %v799_v42 = vmax.f32 %v797_v5, %v798_v8  ;;  %v880_v32 = vmul.f32 1.442695, %v861_v55  ;;  %v967_v17 = vrot.slane %v966_v58, 1  ;;  %1912 = vpow2.f32 %v876_v16 }
 0x1ce   : > { %v794_v50 = vmax.f32 %v792_v20, %v793_v7  ;;  %v863_v59 = vsub.f32 %v2443_v39, %v787_v56  ;;  %v882_v60 = vmul.f32 1.442695, %v862_v57  ;;  %v1015_v51 = vadd.f32 %v1014_v46, %v1013_v35 }
 0x1cf   : > { %v800_v61 = vrot.slane %v799_v42, 1  ;;  %1914 = vpow2.f32 %v878_v48  ;;  %v974_v25 = vrot.slane %v973_v62, 1  ;;  %v981_v26 = vrot.slane %v2506_v3, 1 }
 0x1d0   : > { %v864_v63 = vsub.f32 %v2447_v14, %v794_v50  ;;  %1916 = vpow2.f32 %v880_v32  ;;  %v884_v1 = vmul.f32 1.442695, %v863_v59  ;;  %v968_v29 = vadd.f32 %v967_v17, %v966_v58 }
 0x1d1   : > { %v801_v2 = vmax.f32 %v799_v42, %v800_v61  ;;  %1918 = vpow2.f32 %v882_v60  ;;  %v988_v30 = vrot.slane %v2508_v11, 1  ;;  %v975_v39 = vadd.f32 %v974_v25, %v973_v62 }
 0x1d2   : > { %1920 = vpow2.f32 %v884_v1  ;;  %v886_v34 = vmul.f32 1.442695, %v864_v63  ;;  %v995_v44 = vrot.slane %v994_v36, 1  ;;  %v1002_v12 = vrot.slane %v1001_v49, 1 }
 0x1d3   : > { %v865_v35 = vsub.f32 %v2451_v54, %v801_v2  ;;  %v982_v43 = vadd.f32 %v981_v26, %v2506_v3  ;;  %v1009_v14 = vrot.slane %v2512_v19, 1  ;;  %v989_v18 = vadd.f32 %v988_v30, %v2508_v11 }
 0x1d4   : > { %1922 = vpow2.f32 %v886_v34  ;;  %v996_v52 = vadd.f32 %v995_v44, %v994_v36  ;;  %v1016_v58 = vrot.slane %v1015_v51, 1  ;;  %v1003_v62 = vadd.f32 %v1002_v12, %v1001_v49 }
 0x1d5   : > { %v888_v45 = vmul.f32 1.442695, %v865_v35  ;;  %1924 = vrcp.f32 %v968_v29  ;;  %v1010_v3 = vadd.f32 %v1009_v14, %v2512_v19 }
 0x1d6   : > { %1926 = vrcp.f32 %v975_v39  ;;  %v2528_v53 = vpop.eup %1910  ;;  %v1017_v46 = vadd.f32 %v1016_v58, %v1015_v51 }
 0x1d7   : > { %1928 = vpow2.f32 %v888_v45  ;;  %v2530_v23 = vpop.eup %1912  ;;  %v906_v54 = vsel %vm745_vm0, %v2528_v53, 0.0 }
 0x1d8   : > { %1930 = vrcp.f32 %v982_v43  ;;  %v907_v15 = vrot.slane %v906_v54, 4  ;;  %v913_v11 = vsel %vm745_vm0, %v2530_v23, 0.0 }
 0x1d9   : > { %v2535_v24 = vpop.eup %1914  ;;  %1932 = vrcp.f32 %v989_v18  ;;  %v914_v13 = vrot.slane %v913_v11, 4 }
 0x1da   : > { %v2539_v36 = vpop.eup %1916  ;;  %v920_v49 = vsel %vm745_vm0, %v2535_v24, 0.0  ;;  %1934 = vrcp.f32 %v996_v52  ;;  %v908_v5 = vadd.f32 %v907_v15, %v906_v54 }
 0x1db   : > { %v2543_v27 = vpop.eup %1918  ;;  %v921_v19 = vrot.slane %v920_v49, 4  ;;  %v927_v6 = vsel %vm745_vm0, %v2539_v36, 0.0  ;;  %1936 = vrcp.f32 %v1003_v62  ;;  %v915_v37 = vadd.f32 %v914_v13, %v913_v11 }
 0x1dc   : > { %v2547_v31 = vpop.eup %1920  ;;  %v928_v20 = vrot.slane %v927_v6, 4  ;;  %v934_v0 = vsel %vm745_vm0, %v2543_v27, 0.0  ;;  %1938 = vrcp.f32 %v1010_v3  ;;  %v909_v8 = vrot.slane %v908_v5, 2 }
 0x1dd   : > { %v922_v55 = vadd.f32 %v921_v19, %v920_v49  ;;  %v935_v41 = vrot.slane %v934_v0, 4  ;;  %v941_v16 = vsel %vm745_vm0, %v2547_v31, 0.0  ;;  %v916_v7 = vrot.slane %v915_v37, 2 }
 0x1de   : > { %v2553_v56 = vpop.eup %1922  ;;  %v929_v57 = vadd.f32 %v928_v20, %v927_v6  ;;  %v942_v48 = vrot.slane %v941_v16, 4  ;;  %1940 = vrcp.f32 %v1017_v46  ;;  %v910_v32 = vadd.f32 %v909_v8, %v908_v5 }
 0x1df   : > { %v1925_v42 = vpop.eup %1924  ;;  %v923_v17 = vrot.slane %v922_v55, 2  ;;  %v936_v50 = vadd.f32 %v935_v41, %v934_v0  ;;  %v948_v59 = vsel %vm745_vm0, %v2553_v56, 0.0  ;;  %v917_v1 = vadd.f32 %v916_v7, %v915_v37 }
 0x1e0   : > { %v1927_v60 = vpop.eup %1926  ;;  %v930_v51 = vrot.slane %v929_v57, 2  ;;  %v943_v61 = vadd.f32 %v942_v48, %v941_v16  ;;  %v949_v25 = vrot.slane %v948_v59, 4  ;;  %v2560_v29 = vmul.f32 %v1925_v42, %v2469_v4 }
 0x1e1   : > { %v2557_v63 = vpop.eup %1928  ;;  %v924_v26 = vadd.f32 %v923_v17, %v922_v55  ;;  %v937_v2 = vrot.slane %v936_v50, 2  ;;  %v2565_v35 = vmul.f32 %v1927_v60, %v2474_v9  ;;  %v911_v18 = vrot.slane %v910_v32, 1 }
 0x1e2   : > { %v1931_v30 = vpop.eup %1930  ;;  %v944_v34 = vrot.slane %v943_v61, 2  ;;  %v950_v39 = vadd.f32 %v949_v25, %v948_v59  ;;  %v955_v44 = vsel %vm745_vm0, %v2557_v63, 0.0  ;;  %v931_v43 = vadd.f32 %v930_v51, %v929_v57 }
 0x1e3   : > { %v1933_v12 = vpop.eup %1932  ;;  %v956_v14 = vrot.slane %v955_v44, 4  ;;  %v1039_v45 = vmul.f32 %v1931_v30, %v2478_v28  ;;  %v938_v58 = vadd.f32 %v937_v2, %v936_v50  ;;  %v918_v9 = vrot.slane %v917_v1, 1 }
 0x1e4   : > { %v1935_v52 = vpop.eup %1934  ;;  %v945_v62 = vadd.f32 %v944_v34, %v943_v61  ;;  %v951_v4 = vrot.slane %v950_v39, 2  ;;  %v1041_v54 = vmul.f32 %v1933_v12, %v2484_v33  ;;  %v912_v19 = vadd.f32 %v911_v18, %v910_v32 }
 0x1e5   : > { %v1937_v3 = vpop.eup %1936  ;;  %v957_v15 = vadd.f32 %v956_v14, %v955_v44  ;;  %v1043_v11 = vmul.f32 %v1935_v52, %v2488_v38  ;;  %v1186_v13 = vcombine.low %v2560_v29, %v1039_v45  ;;  %v925_v33 = vrot.slane %v924_v26, 1 }
 0x1e6   : > { %v1939_v49 = vpop.eup %1938  ;;  %v952_v46 = vadd.f32 %v951_v4, %v950_v39  ;;  %v1045_v5 = vmul.f32 %v1937_v3, %v2492_v47  ;;  %v1202_v28 = vcombine.low %v2565_v35, %v1041_v54  ;;  %v932_v38 = vrot.slane %v931_v43, 1 }
 0x1e7   : > { %v958_v6 = vrot.slane %v957_v15, 2  ;;  %v1047_v37 = vmul.f32 %v1939_v49, %v2496_v21  ;;  %v1194_v20 = vrot.slane %v1186_v13, %v2329_v10  ;;  %v939_v55 = vrot.slane %v938_v58, 1 }
 0x1e8   : > { %v1941_v0 = vpop.eup %1940  ;;  %v1210_v8 = vrot.slane %v1202_v28, %v2329_v10  ;;  %v946_v41 = vrot.slane %v945_v62, 1  ;;  %v919_v47 = vadd.f32 %v918_v9, %v917_v1  ;;  %v926_v42 = vadd.f32 %v925_v33, %v924_v26 }
 0x1e9   : > { %v959_v16 = vadd.f32 %v958_v6, %v957_v15  ;;  %v1049_v7 = vmul.f32 %v1941_v0, %v2500_v40  ;;  %v1218_v57 = vcombine.low %v1043_v11, %v1047_v37  ;;  %v933_v32 = vadd.f32 %v932_v38, %v931_v43 }
 0x1ea   : > { %v1250_v48 = vcombine.low %v1194_v20, %v1210_v8  ;;  %v953_v50 = vrot.slane %v952_v46, 1  ;;  %v940_v51 = vadd.f32 %v939_v55, %v938_v58  ;;  %v947_v61 = vadd.f32 %v946_v41, %v945_v62 }
 0x1eb   : > { %v1226_v17 = vrot.slane %v1218_v57, %v2329_v10  ;;  %v1234_v21 = vcombine.low %v1045_v5, %v1049_v7  ;;  %v960_v59 = vrot.slane %v959_v16, 1  ;;  %1942 = vrcp.f32 %v912_v19 }
 0x1ec   : > { %v2579_v60 = vrot.slane %v1250_v48, %v2335_v22  ;;  %1944 = vrcp.f32 %v919_v47  ;;  %v1251_v40 = vcombine.high %v1194_v20, %v1210_v8  ;;  %v1187_v1 = vcombine.high %v2560_v29, %v1039_v45 }
 0x1ed   : > { %v1242_v25 = vrot.slane %v1234_v21, %v2329_v10  ;;  %v954_v2 = vadd.f32 %v953_v50, %v952_v46  ;;  %v961_v26 = vadd.f32 %v960_v59, %v959_v16  ;;  %1946 = vrcp.f32 %v926_v42 }
 0x1ee   : > { %v1203_v30 = vcombine.high %v2565_v35, %v1041_v54  ;;  %1948 = vrcp.f32 %v933_v32  ;;  %v1219_v44 = vcombine.high %v1043_v11, %v1047_v37  ;;  %v1235_v12 = vcombine.high %v1045_v5, %v1049_v7 }
 0x1ef   : > { %v1282_v34 = vcombine.low %v1226_v17, %v1242_v25  ;;  %v1283_v39 = vcombine.high %v1226_v17, %v1242_v25  ;;  %1950 = vrcp.f32 %v940_v51  ;;  %v1265_v14 = vrot.slane %v1251_v40, %v2335_v22 }
 0x1f0   : > { %1952 = vrcp.f32 %v947_v61  ;;  %v1201_v45 = vrot.slane %v1187_v1, %v2329_v10  ;;  %v1217_v18 = vrot.slane %v1203_v30, %v2329_v10  ;;  %v1233_v52 = vrot.slane %v1219_v44, %v2329_v10 }
 0x1f1   : > { %v2585_v43 = vrot.slane %v1282_v34, %v2335_v22  ;;  %1954 = vrcp.f32 %v954_v2  ;;  %v1297_v29 = vrot.slane %v1283_v39, %v2335_v22  ;;  %v1249_v58 = vrot.slane %v1235_v12, %v2329_v10 }
 0x1f2   : > { %1956 = vrcp.f32 %v961_v26  ;;  %v1266_v11 = vcombine.low %v1201_v45, %v1217_v18  ;;  %v1267_v16 = vcombine.high %v1201_v45, %v1217_v18 }
 0x1f3   : > { %v1315_v35 = vcombine.high %v2579_v60, %v2585_v43  ;;  %v1314_v62 = vcombine.low %v2579_v60, %v2585_v43  ;;  %v1316_v15 = vcombine.low %v1265_v14, %v1297_v29  ;;  %v1298_v13 = vcombine.low %v1233_v52, %v1249_v58 }
 0x1f4   : > { %v1317_v6 = vcombine.high %v1265_v14, %v1297_v29  ;;  %v1274_v33 = vrot.slane %v1266_v11, %v2335_v22  ;;  %v1299_v7 = vcombine.high %v1233_v52, %v1249_v58  ;;  %v1281_v17 = vrot.slane %v1267_v16, %v2335_v22 }
 0x1f5   : > { %1326 = vrot.lane.b32.xlu1 %v1315_v35, %s2055_s22  ;;  %v1943_v4 = vpop.eup %1942  ;;  %v1306_v0 = vrot.slane %v1298_v13, %v2335_v22 }
 0x1f6   : > { %v1945_v54 = vpop.eup %1944  ;;  %v1019_v3 = vmul.f32 %v1943_v4, %v2528_v53 }
 0x1f7   : > { %v1947_v9 = vpop.eup %1946  ;;  %v1021_v49 = vmul.f32 %v1945_v54, %v2530_v23  ;;  %v1318_v47 = vcombine.low %v1274_v33, %v1306_v0  ;;  %v1319_v32 = vcombine.high %v1274_v33, %v1306_v0 }
 0x1f8   : > { %v1949_v46 = vpop.eup %1948  ;;  %v1023_v5 = vmul.f32 %v1947_v9, %v2535_v24 }
 0x1f9   : > { %1334 = vrot.lane.b32.xlu1 %v1316_v15, %s2056_s23  ;;  %v1951_v28 = vpop.eup %1950  ;;  %v1025_v19 = vmul.f32 %v1949_v46, %v2539_v36 }
 0x1fa   : > { %v1953_v37 = vpop.eup %1952  ;;  %v1027_v20 = vmul.f32 %v1951_v28, %v2543_v27  ;;  %v1050_v53 = vcombine.low %v1019_v3, %v1023_v5  ;;  %v1051_v50 = vcombine.high %v1019_v3, %v1023_v5 }
 0x1fb   : > { %v1955_v8 = vpop.eup %1954  ;;  %v1029_v23 = vmul.f32 %v1953_v37, %v2547_v31  ;;  %v1066_v38 = vcombine.low %v1021_v49, %v1025_v19  ;;  %v1067_v59 = vcombine.high %v1021_v49, %v1025_v19 }
 0x1fc   : > { %v1957_v24 = vpop.eup %1956  ;;  %v1031_v55 = vmul.f32 %v1955_v8, %v2553_v56  ;;  %v1058_v41 = vrot.slane %v1050_v53, %v2329_v10  ;;  %v1065_v26 = vrot.slane %v1051_v50, %v2329_v10 }
 0x1fd   : > { %1342 = vrot.lane.b32.xlu1 %v1317_v6, %s2057_s25  ;;  %v1033_v36 = vmul.f32 %v1957_v24, %v2557_v63  ;;  %v1074_v27 = vrot.slane %v1066_v38, %v2329_v10  ;;  %v1313_v63 = vrot.slane %v1299_v7, %v2335_v22  ;;  %v1081_v30 = vrot.slane %v1067_v59, %v2329_v10 }
 0x1fe   : > { %v1082_v57 = vcombine.low %v1027_v20, %v1031_v55  ;;  %v1083_v51 = vcombine.high %v1027_v20, %v1031_v55 }
 0x1ff   : > { %v1098_v48 = vcombine.low %v1029_v23, %v1033_v36  ;;  %v1114_v42 = vcombine.low %v1058_v41, %v1074_v27  ;;  %v1115_v21 = vcombine.high %v1058_v41, %v1074_v27  ;;  %v1099_v1 = vcombine.high %v1029_v23, %v1033_v36 }
 0x200   : > { %v1090_v31 = vrot.slane %v1082_v57, %v2329_v10  ;;  %v1097_v34 = vrot.slane %v1083_v51, %v2329_v10  ;;  %v1320_v39 = vcombine.low %v1281_v17, %v1313_v63  ;;  %v1321_v18 = vcombine.high %v1281_v17, %v1313_v63 }
 0x201   : > { %1350 = vrot.lane.b32.xlu1 %v1318_v47, %s2058_s26  ;;  %v1106_v56 = vrot.slane %v1098_v48, %v2329_v10  ;;  %v2618_v61 = vrot.slane %v1114_v42, %v2335_v22  ;;  %v1129_v12 = vrot.slane %v1115_v21, %v2335_v22  ;;  %v1113_v29 = vrot.slane %v1099_v1, %v2329_v10 }
 0x202   : > { %v1130_v52 = vcombine.low %v1065_v26, %v1081_v30  ;;  %v1131_v15 = vcombine.high %v1065_v26, %v1081_v30 }
 0x203   : > { %v1146_v25 = vcombine.low %v1090_v31, %v1106_v56  ;;  %v1147_v40 = vcombine.high %v1090_v31, %v1106_v56  ;;  %v1162_v58 = vcombine.low %v1097_v34, %v1113_v29  ;;  %v1163_v11 = vcombine.high %v1097_v34, %v1113_v29 }
 0x204   : > { %v1138_v54 = vrot.slane %v1130_v52, %v2335_v22  ;;  %v1145_v9 = vrot.slane %v1131_v15, %v2335_v22 }
 0x205   : > { %1358 = vrot.lane.b32.xlu1 %v1319_v32, %s2059_s27  ;;  %v2622_v2 = vrot.slane %v1146_v25, %v2335_v22  ;;  %v1161_v14 = vrot.slane %v1147_v40, %v2335_v22  ;;  %v1170_v10 = vrot.slane %v1162_v58, %v2335_v22  ;;  %v1177_v49 = vrot.slane %v1163_v11, %v2335_v22 }
 0x207   : > { %v1179_v44 = vcombine.high %v2618_v61, %v2622_v2  ;;  %v1178_v45 = vcombine.low %v2618_v61, %v2622_v2  ;;  %v1180_v35 = vcombine.low %v1129_v12, %v1161_v14  ;;  %v1181_v4 = vcombine.high %v1129_v12, %v1161_v14 }
 0x208   : > { %v1182_v3 = vcombine.low %v1138_v54, %v1170_v10  ;;  %v1183_v13 = vcombine.high %v1138_v54, %v1170_v10  ;;  %v1184_v46 = vcombine.low %v1145_v9, %v1177_v49  ;;  %v1185_v5 = vcombine.high %v1145_v9, %v1177_v49 }
 0x209   : > { %1366 = vrot.lane.b32.xlu1 %v1320_v39, %s2060_s29  ;;  %1324 = vrot.lane.b32.xlu0 %v1179_v44, %s2055_s22 }
 0x20d   : > { %1374 = vrot.lane.b32.xlu1 %v1321_v18, %s2061_s5  ;;  %1332 = vrot.lane.b32.xlu0 %v1180_v35, %s2056_s23 }
 0x211   : > { %1340 = vrot.lane.b32.xlu0 %v1181_v4, %s2057_s25 }
 0x215   : > { %1348 = vrot.lane.b32.xlu0 %v1182_v3, %s2058_s26 }
 0x219   : > { %1356 = vrot.lane.b32.xlu0 %v1183_v13, %s2059_s27 }
 0x21d   : > { %1364 = vrot.lane.b32.xlu0 %v1184_v46, %s2060_s29 }
 0x221   : > { %1372 = vrot.lane.b32.xlu0 %v1185_v5, %s2061_s5 }
 0x267   : > { %v1327_v28 = vpop.permute.xlu1 %1326 }
 0x268   : > { %v1379_v53 = vsel %vm745_vm0, %v1314_v62, %v1327_v28 }
 0x26b   : > { %v1335_v19 = vpop.permute.xlu1 %1334 }
 0x26c   : > { %v1382_v22 = vsel %vm1380_vm1, %v1379_v53, %v1335_v19 }
 0x26f   : > { %v1343_v6 = vpop.permute.xlu1 %1342 }
 0x270   : > { %v1385_v8 = vsel %vm1383_vm2, %v1382_v22, %v1343_v6 }
 0x273   : > { %v1351_v37 = vpop.permute.xlu1 %1350 }
 0x274   : > { %v1388_v23 = vsel %vm1386_vm3, %v1385_v8, %v1351_v37 }
 0x277   : > { %v1359_v20 = vpop.permute.xlu1 %1358 }
 0x278   : > { %v1391_v38 = vsel %vm1389_vm4, %v1388_v23, %v1359_v20 }
 0x27b   : > { %v1367_v33 = vpop.permute.xlu1 %1366  ;;  %v1325_v0 = vpop.permute.xlu0 %1324 }
 0x27c   : > { %v1394_v60 = vsel %vm1392_vm5, %v1391_v38, %v1367_v33  ;;  %v1378_v27 = vsel %vm745_vm0, %v1178_v45, %v1325_v0 }
 0x27f   : > { %v1375_v43 = vpop.permute.xlu1 %1374  ;;  %v1333_v62 = vpop.permute.xlu0 %1332 }
 0x280   : > { %v1397_v24 = vsel %vm1395_vm6, %v1394_v60, %v1375_v43  ;;  %v1381_v16 = vsel %vm1380_vm1, %v1378_v27, %v1333_v62 }
 0x281   : > { %1400 = vst.msk [vmem:[%s2654_s12 + $0x8] sm:$0xff] %vm1398_vm7, %v1397_v24 }
 0x283   : > { %v1341_v55 = vpop.permute.xlu0 %1340 }
 0x284   : > { %v1384_v57 = vsel %vm1383_vm2, %v1381_v16, %v1341_v55 }
 0x287   : > { %v1349_v41 = vpop.permute.xlu0 %1348 }
 0x288   : > { %v1387_v47 = vsel %vm1386_vm3, %v1384_v57, %v1349_v41 }
 0x28b   : > { %v1357_v36 = vpop.permute.xlu0 %1356 }
 0x28c   : > { %v1390_v48 = vsel %vm1389_vm4, %v1387_v47, %v1357_v36 }
 0x28f   : > { %v1365_v7 = vpop.permute.xlu0 %1364  ;;  %1407 = sbr.rel (!%p2107_p4) target bundleno = 711 (0x2c7), region = 36 }
 0x290   : > { %v1393_v42 = vsel %vm1392_vm5, %v1390_v48, %v1365_v7 }
 0x293   : > { %v1373_v31 = vpop.permute.xlu0 %1372 }
 0x294   : > { %v1396_v56 = vsel %vm1395_vm6, %v1393_v42, %v1373_v31 }
 0x295   : > { %1399 = vst.msk [vmem:[%s2654_s12] sm:$0xff] %vm1398_vm7, %v1396_v56 }
 0x296   : > { %s2717_s8 = smov (!%p1410_p8, %s1409_s8), 2 }
 0x297   : > { %s1631_s28 = sshll.u32 %s2717_s8, 7 }
 0x298   : > { %p1634_p9 = scmp.eq.s32.totalorder %s1631_s28, 0 }
 0x299   : > { %s2680_s11 = sshrl.u32 (!%p1634_p9), %s2717_s8, 1 }
 0x29a   : > { %1418 = sbr.rel (%p1634_p9) target bundleno = 711 (0x2c7), region = 40  ;;  %p1635_p10 = scmp.le.s32.totalorder (!%p1634_p9), %s2680_s11, 0 }
 0x2a1   : > { %1576 = sbr.rel (%p1635_p10) target bundleno = 690 (0x2b2), region = 116  ;;  %s2014_s15 = smov (!%p1635_p10), %s2674_s24  }
 0x2a2   : > { %s2018_s20 = smov (!%p1635_p10), %s2654_s12   ;;  %s2022_s30 = smov (!%p1635_p10), 0  }
 0x2a3   : > { %s2026_s14 = smov (!%p1635_p10), 0  }
 0x2a8 LB: >> { %v1482_v32 = vld [vmem:[%s2020_s20] sm:$0xff]  ;;  %v1484_v17 = vld [vmem:[%s2020_s20 + $0x8] sm:$0xff]  ;;  %s1486_s17 = sadd.s32 1, %s2024_s30  ;;  %s1476_s14 = sadd.s32 1, %s2028_s14   ;;  %s2028_s14 = sphi %s2026_s14, %s1476_s14   ;;  %s2024_s30 = sphi %s2022_s30, %s2023_s30   ;;  %s2020_s20 = sphi %s2018_s20, %s1491_s20   ;;  %s2016_s15 = sphi %s2014_s15, %s1492_s15  }
 0x2a9   : >> { %1483 = vst [vmem:[%s2016_s15] sm:$0xff] %v1482_v32  ;;  %1485 = vst [vmem:[%s2016_s15 + $0x8] sm:$0xff] %v1484_v17  ;;  %p1487_p11 = scmp.ge.s32.totalorder %s1486_s17, %s2680_s11  ;;  %p1475_p12 = scmp.ge.s32.totalorder %s1476_s14, %s2680_s11 }
 0x2ab   : >> { %s2719_s17 = smov (%p1487_p11, %s1486_s17), 0  ;;  %1478 = sbr.rel (!%p1475_p12) target bundleno = 680 (0x2a8), region = 122 }
 0x2ac   : >> { %s1636_s18 = sshll.u32 %s2719_s17, 4  ;;  %s2023_s30 = smov %s2719_s17  }
 0x2ad   : >> { %s1491_s20 = scalar_lea.vmem %s2654_s12, %s1636_s18 [#allocation2]   ;;  %s1492_s15 = scalar_lea.vmem %s2674_s24, %s1636_s18  }
 0x2b2 PF: > { %s2690_s21 = sand.u32 1, %s2717_s8   ;;  %s1648_s22 = sshll.u32 %s2680_s11, 4 }
 0x2b3   : > { %s1497_s23 = scalar_lea.vmem %s2654_s12, %s1648_s22 [#allocation2]   ;;  %s1499_s25 = scalar_lea.vmem %s2674_s24, %s1648_s22  }
 0x2b4   : > { %p1641_p13 = scmp.le.s32.totalorder %s2690_s21, 0 }
 0x2b5   : > { %s2030_s26 = smov (!%p1641_p13), %s1499_s25   ;;  %s2034_s27 = smov (!%p1641_p13), %s1497_s23  }
 0x2b6   : > { %1590 = sbr.rel (%p1641_p13) target bundleno = 711 (0x2c7), region = 127  ;;  %s2038_s29 = smov (!%p1641_p13), 0  }
 0x2b7   : > { %s2042_s5 = smov (!%p1641_p13), 0  }
 0x2bd LB: >> { %v1509_v63 = vld [vmem:[%s2036_s27] sm:$0xff]  ;;  %s1511_s6 = sadd.s32 1, %s2040_s29  ;;  %s1503_s5 = sadd.s32 1, %s2044_s5   ;;  %s2044_s5 = sphi %s2042_s5, %s1503_s5   ;;  %s2040_s29 = sphi %s2038_s29, %s2039_s29   ;;  %s2036_s27 = sphi %s2034_s27, %s1516_s27   ;;  %s2032_s26 = sphi %s2030_s26, %s1517_s26  }
 0x2be   : >> { %1510 = vst [vmem:[%s2032_s26] sm:$0xff] %v1509_v63  ;;  %p1512_p0 = scmp.ge.s32.totalorder %s1511_s6, %s2690_s21  ;;  %p1502_p1 = scmp.ge.s32.totalorder %s1503_s5, %s2690_s21 }
 0x2c0   : >> { %s2721_s6 = smov (%p1512_p0, %s1511_s6), 0  ;;  %1505 = sbr.rel (!%p1502_p1) target bundleno = 701 (0x2bd), region = 133 }
 0x2c1   : >> { %s1642_s7 = sshll.u32 %s2721_s6, 3  ;;  %s2039_s29 = smov %s2721_s6  }
 0x2c2   : >> { %s1516_s27 = scalar_lea.vmem %s1497_s23, %s1642_s7 [#allocation2]   ;;  %s1517_s26 = scalar_lea.vmem %s1499_s25, %s1642_s7  }
 0x2c7 PF: > { %p10_p2 = scmp.ge.s32.totalorder %s2097_s16, 6   ;;  %s2713_s12 = smov %s2008_s13 }
 0x2c8   : > { %s2714_s13 = smov %s2105_s19  ;;  %s2715_s14 = smov %s2097_s16 }
 0x2c9   :  { %12 = sbr.rel (!%p10_p2) target bundleno = 2 (0x2), region = 144 }

</bundles_post_ra>
